<compile_context>
chip_gen: v6e
topology: v6e:2x2x1
jax: 0.10.0
libtpu: 0.0.40
codegen_flags: <defaults>
</compile_context>

<pallas_src>
import functools
import math

import jax
import jax.numpy as jnp
from jax.experimental import pallas as pl
from jax.experimental.pallas import tpu as pltpu

_MU = 5000.0
_INV_LOG1P_MU = 1.0 / math.log(1.0 + _MU)

_LANE = 128
_SUBLANE = 8
_MAX_TILE_ROWS = 256          # 256 x 128 f32 = 128 KiB per input tile


def _irf_loss_kernel(gt_ref, pred_ref, out_ref, *, use_l2):
    # gt_ref / pred_ref : (tile_rows, 128) f32 tiles in VMEM.
    # out_ref           : (1, 8, 128) f32 -- this tile's partial sum broadcast
    #                     over the block (lane-dense store); wrapper reads [:,0,0].
    g = gt_ref[...]
    p = pred_ref[...]
    scaled = jnp.log(1.0 + _MU * g) * _INV_LOG1P_MU     # hdr_scale (EUP log)
    d = scaled - p
    per_elem = d * d if use_l2 else jnp.abs(d)
    s = jnp.sum(per_elem)                               # cross-lane reduce (XLU)
    out_ref[...] = jnp.broadcast_to(s, out_ref.shape)


def irf_loss(gt_irf, predicted_irf, loss_type="L1"):
    """Mean-reduced L1/L2 loss between hdr_scale(gt_irf) and predicted_irf.

    gt_irf, predicted_irf: arrays of identical shape, e.g. (B, H*W, 3).
    """
    assert gt_irf.shape == predicted_irf.shape
    if loss_type == "L1":
        use_l2 = False
    elif loss_type == "L2":
        use_l2 = True
    else:
        raise Exception("Unknown loss_type!")

    total = math.prod(gt_irf.shape)
    rows = -(-total // _LANE)                           # cdiv to lane rows
    rows = -(-rows // _SUBLANE) * _SUBLANE              # round up to sublane mult
    tile_rows = min(_MAX_TILE_ROWS, rows)
    grid = -(-rows // tile_rows)
    rows = grid * tile_rows
    padded = rows * _LANE

    def _prep(a):
        flat = jnp.ravel(a).astype(jnp.float32)
        flat = jnp.pad(flat, (0, padded - total))       # zeros: contribute 0 loss
        return flat.reshape(rows, _LANE)

    gt2d = _prep(gt_irf)
    pred2d = _prep(predicted_irf)

    partials = pl.pallas_call(
        functools.partial(_irf_loss_kernel, use_l2=use_l2),
        out_shape=jax.ShapeDtypeStruct((grid, _SUBLANE, _LANE), jnp.float32),
        grid=(grid,),
        in_specs=[
            pl.BlockSpec((tile_rows, _LANE), lambda i: (i, 0)),
            pl.BlockSpec((tile_rows, _LANE), lambda i: (i, 0)),
        ],
        out_specs=pl.BlockSpec((1, _SUBLANE, _LANE), lambda i: (i, 0, 0)),
        compiler_params=pltpu.CompilerParams(
            dimension_semantics=("parallel",),          # v7x: 2 TCs split tiles
            vmem_limit_bytes=32 * 1024 * 1024,          # safe on v5e/v6e/v7x
        ),
    )(gt2d, pred2d)

    return jnp.sum(partials[:, 0, 0]) / float(total)


if __name__ == "__main__":
    # Shapes implied by the module docstring: [b, h*w, 3] radiance tensors.
    B, HW, C = 2, 16 * 16, 3
    key = jax.random.PRNGKey(0)
    k1, k2 = jax.random.split(key)
    gt = jax.random.uniform(k1, (B, HW, C), dtype=jnp.float32) * 8.0   # HDR-ish
    pred = jax.random.uniform(k2, (B, HW, C), dtype=jnp.float32)

    loss_fn = jax.jit(functools.partial(irf_loss, loss_type="L1"))
    loss = loss_fn(gt, pred)
    jax.block_until_ready(loss)

    # Plain-JAX reference of the same formula (sanity check of the kernel).
    ref = jnp.mean(jnp.abs(jnp.log(1.0 + _MU * gt) * _INV_LOG1P_MU - pred))
    assert loss.shape == () and bool(jnp.isfinite(loss))
    assert bool(jnp.allclose(loss, ref, rtol=1e-5, atol=1e-6)), (loss, ref)
    print("KERNEL_OK")
</pallas_src>

<mosaic_0001>
module attributes {stable_mosaic.version = 11 : i64} {
  func.func @_irf_loss_kernel(%arg0: i32, %arg1: memref<16x128xf32, #tpu.memory_space<vmem>>, %arg2: memref<16x128xf32, #tpu.memory_space<vmem>>, %arg3: memref<1x8x128xf32, #tpu.memory_space<vmem>>) attributes {dimension_semantics = [#tpu.dimension_semantics<parallel>], iteration_bounds = array<i64: 1>, scalar_prefetch = 0 : i64, scratch_operands = 0 : i64, tpu.core_type = #tpu.core_type<tc>, window_params = [{transform_indices = @transform_0, window_bounds = array<i64: 16, 128>}, {transform_indices = @transform_1, window_bounds = array<i64: 16, 128>}, {transform_indices = @transform_2, window_bounds = array<i64: 1, 8, 128>}]} {
    %c0 = arith.constant 0 : index
    %c0_0 = arith.constant 0 : index
    %0 = vector.load %arg1[%c0, %c0_0] : memref<16x128xf32, #tpu.memory_space<vmem>>, vector<16x128xf32>
    %c0_1 = arith.constant 0 : index
    %c0_2 = arith.constant 0 : index
    %1 = vector.load %arg2[%c0_1, %c0_2] : memref<16x128xf32, #tpu.memory_space<vmem>>, vector<16x128xf32>
    %cst = arith.constant 5.000000e+03 : f32
    %2 = vector.broadcast %cst : f32 to vector<16x128xf32>
    %3 = arith.mulf %2, %0 : vector<16x128xf32>
    %cst_3 = arith.constant 1.000000e+00 : f32
    %4 = vector.broadcast %cst_3 : f32 to vector<16x128xf32>
    %5 = arith.addf %4, %3 : vector<16x128xf32>
    %6 = math.log %5 : vector<16x128xf32>
    %cst_4 = arith.constant 0.117406815 : f32
    %7 = vector.broadcast %cst_4 : f32 to vector<16x128xf32>
    %8 = arith.mulf %6, %7 : vector<16x128xf32>
    %9 = arith.subf %8, %1 : vector<16x128xf32>
    %10 = math.absf %9 : vector<16x128xf32>
    %11 = vector.shape_cast %10 : vector<16x128xf32> to vector<1x16x128xf32>
    %cst_5 = arith.constant dense<0.000000e+00> : vector<1xf32>
    %12 = vector.multi_reduction <add>, %11, %cst_5 [1, 2] : vector<1x16x128xf32> to vector<1xf32>
    %13 = vector.shape_cast %12 : vector<1xf32> to vector<1x1x1xf32>
    %14 = vector.extract %13[0, 0, 0] : f32 from vector<1x1x1xf32>
    %15 = vector.broadcast %14 : f32 to vector<1x8x128xf32>
    %c0_6 = arith.constant 0 : index
    %c0_7 = arith.constant 0 : index
    %c0_8 = arith.constant 0 : index
    %16 = vector.load %arg3[%c0_6, %c0_7, %c0_8] : memref<1x8x128xf32, #tpu.memory_space<vmem>>, vector<1x8x128xf32>
    tpu.vector_store %arg3[%c0_6, %c0_7, %c0_8], %15 {strides = array<i32>} : memref<1x8x128xf32, #tpu.memory_space<vmem>>, vector<1x8x128xf32>,
    return
  }
  func.func @transform_0(%arg0: i32) -> (i32, i32) {
    %c0_i32 = arith.constant 0 : i32
    %c0_i32_0 = arith.constant 0 : i32
    return %arg0, %c0_i32 : i32, i32
  }
  func.func @transform_1(%arg0: i32) -> (i32, i32) {
    %c0_i32 = arith.constant 0 : i32
    %c0_i32_0 = arith.constant 0 : i32
    return %arg0, %c0_i32 : i32, i32
  }
  func.func @transform_2(%arg0: i32) -> (i32, i32, i32) {
    %c0_i32 = arith.constant 0 : i32
    %c0_i32_0 = arith.constant 0 : i32
    %c0_i32_1 = arith.constant 0 : i32
    return %arg0, %c0_i32, %c0_i32_0 : i32, i32, i32
  }
}

</mosaic_0001>

<bundles_post_ra>
// kernel: irf_loss.1
= control target key start
LH: loop header
LB: loop body
LE: loop exit
PB: predicated region body
PF: predicated region fallthrough
CT: control target
= control target key end

     0   :  { %s81_s0 = inlined_call_operand.vmem [shape: f32[16,128], index: 0, kind: input, shape index: {}]   ;;  %s82_s1 = inlined_call_operand.vmem [shape: f32[16,128], index: 1, kind: input, shape index: {}]   ;;  %s83_s2 = inlined_call_operand.vmem [shape: f32[1,8,128], index: 2, kind: output, shape index: {}]  }
   0x1   :  { %v11_v0 = vld [vmem:[%s81_s0] sm:$0xff]  ;;  %v12_v1 = vld [vmem:[%s81_s0 + $0x8] sm:$0xff] }
   0x2   :  { %v15_v2 = vmul.f32 5000.0, %v11_v0  ;;  %v16_v3 = vmul.f32 5000.0, %v12_v1  ;;  %v13_v9 = vld [vmem:[%s82_s1] sm:$0xff]  ;;  %v14_v11 = vld [vmem:[%s82_s1 + $0x8] sm:$0xff] }
   0x4   :  { %v17_v4 = vadd.f32 1.0, %v15_v2  ;;  %v18_v5 = vadd.f32 1.0, %v16_v3 }
   0x6   :  { %47 = vlog2.f32 %v17_v4 }
   0x7   :  { %49 = vlog2.f32 %v18_v5 }
  0x13   :  { %v48_v6 = vpop.eup %47 }
  0x14   :  { %v50_v7 = vpop.eup %49  ;;  %v20_v8 = vmul.f32 0.6931472, %v48_v6 }
  0x15   :  { %v22_v10 = vmul.f32 0.6931472, %v50_v7 }
  0x16   :  { %v23_v12 = vmul.f32 0.117406815, %v20_v8 }
  0x17   :  { %v24_v13 = vmul.f32 0.117406815, %v22_v10 }
  0x18   :  { %v25_v14 = vsub.f32 %v23_v12, %v13_v9 }
  0x19   :  { %v26_v15 = vsub.f32 %v24_v13, %v14_v11 }
  0x1a   :  { %v27_v16 = vand.u32 2147483647, %v25_v14 }
  0x1b   :  { %v28_v17 = vand.u32 2147483647, %v26_v15 }
  0x1d   :  { %v29_v18 = vadd.f32 %v28_v17, %v27_v16 }
  0x1f   :  { %30 = vadd.xlane.f32.xlu0 %v29_v18 }
  0xa8   :  { %v31_v19 = vpop.xlane.xlu0 %30 }
  0xa9   :  { %v32_v20 = vrot.slane %v31_v19, 4 }
  0xab   :  { %v33_v21 = vadd.f32 %v32_v20, %v31_v19 }
  0xad   :  { %v34_v22 = vrot.slane %v33_v21, 2 }
  0xaf   :  { %v35_v23 = vadd.f32 %v34_v22, %v33_v21 }
  0xb1   :  { %v36_v24 = vrot.slane %v35_v23, 1 }
  0xb3   :  { %v37_v25 = vadd.f32 %v36_v24, %v35_v23 }
  0xb5   :  { %45 = vpush %v37_v25 }
  0xe6   :  { %s46_s0 = spop %45 }
  0xe7   :  { %v39_v26 = vstv %s46_s0 }
  0xe8   :  { %40 = vst [vmem:[%s83_s2] sm:$0xff] %v39_v26 }

</bundles_post_ra>
